<compile_context>
chip_gen: v5e
topology: v5e:2x2
jax: 0.10.0
libtpu: 0.0.40
codegen_flags: <defaults>
</compile_context>

<pallas_src>
import jax
import jax.numpy as jnp
from jax.experimental import pallas as pl
from jax.experimental.pallas import tpu as pltpu

# ----- small, module-consistent sizes -----
B = 2           # batch
N = 8           # tokens (sequence length)
EMB = 32        # emb_dim
N_HEAD = 4      # n_head
HD = EMB // N_HEAD          # head dim
SCALE = HD ** (-0.5)        # scaling = (emb_dim // n_head) ** -0.5


def mha_kernel(x_ref, wqkv_ref, wproj_ref, bproj_ref, o_ref):
    x = x_ref[...]                                        # (B*N, EMB) f32
    acc = jnp.zeros((B * N, EMB), dtype=jnp.float32)

    # Static (unrolled) loop over heads.  Every per-head weight is selected by
    # a leading-dim index of the pre-arranged weight tensors, so there is no
    # lane slicing, no concatenation and no transpose inside the kernel; the
    # batch dimension is fused into each head's contractions.
    for h in range(N_HEAD):
        # per-head projections: (B*N, EMB) @ (EMB, HD) -> (B*N, HD)
        # (softmax scaling is already folded into the q weight)
        q = jnp.dot(x, wqkv_ref[0, h], preferred_element_type=jnp.float32)
        k = jnp.dot(x, wqkv_ref[1, h], preferred_element_type=jnp.float32)
        v = jnp.dot(x, wqkv_ref[2, h], preferred_element_type=jnp.float32)

        # batch the attention contractions over B (tile-aligned reshape:
        # (16, 8) -> (2, 8, 8), minor dim unchanged, 8-row sublane groups)
        q = q.reshape(B, N, HD)
        k = k.reshape(B, N, HD)
        v = v.reshape(B, N, HD)

        # scores without any explicit transpose (contraction on last dims)
        s = jnp.einsum("bid,bjd->bij", q, k,
                       preferred_element_type=jnp.float32)         # (B, N, N)
        # TODO(synk): mask branch (masked_fill) omitted — module is called with mask=None
        s = s - jnp.max(s, axis=-1, keepdims=True)
        p = jnp.exp(s)
        p = p * pl.reciprocal(jnp.sum(p, axis=-1, keepdims=True), approx=True)

        o_h = jnp.einsum("bij,bjd->bid", p, v,
                         preferred_element_type=jnp.float32)       # (B, N, HD)

        # fold this head straight into the output projection: no concat needed
        acc = acc + jnp.dot(o_h.reshape(B * N, HD), wproj_ref[h],
                            preferred_element_type=jnp.float32)    # (B*N, EMB)

    # TODO(synk): dropout (p=0 in the module default) is the identity — omitted.
    o_ref[...] = (acc + bproj_ref[...]).astype(o_ref.dtype)


@jax.jit
def multi_head_attention(x, w_qkv_heads, w_proj_heads, b_proj):
    """x: (B, N, EMB); w_qkv_heads: (3, H, EMB, HD) with SCALE folded into q;
    w_proj_heads: (H, HD, EMB); b_proj: (1, EMB)."""
    Bx, Nx, Cx = x.shape
    x_flat = x.reshape(Bx * Nx, Cx)
    out_flat = pl.pallas_call(
        mha_kernel,
        out_shape=jax.ShapeDtypeStruct((Bx * Nx, Cx), x.dtype),
        in_specs=[
            pl.BlockSpec(memory_space=pltpu.MemorySpace.VMEM),
            pl.BlockSpec(memory_space=pltpu.MemorySpace.VMEM),
            pl.BlockSpec(memory_space=pltpu.MemorySpace.VMEM),
            pl.BlockSpec(memory_space=pltpu.MemorySpace.VMEM),
        ],
        out_specs=pl.BlockSpec(memory_space=pltpu.MemorySpace.VMEM),
    )(x_flat, w_qkv_heads, w_proj_heads, b_proj)
    return out_flat.reshape(Bx, Nx, Cx)


def prepare_params(w_qkv_t, w_proj_t):
    """One-time host-side parameter preparation (constant transforms, not a
    per-call op):
      * fold the softmax scaling into the q columns of the qkv weight,
      * re-arrange the qkv weight as (3, H, EMB, HD) and the proj weight as
        (H, HD, EMB), so the kernel selects per-head weights with leading-dim
        indices (no lane slicing / concatenation inside the kernel).
    Column layout of w_qkv_t is [q | k | v], head h in columns h*HD:(h+1)*HD,
    matching the PyTorch reshape(B, N, 3, H, HD)."""
    w_qkv_scaled = w_qkv_t.at[:, :EMB].multiply(SCALE)
    w_qkv_heads = w_qkv_scaled.reshape(EMB, 3, N_HEAD, HD).transpose(1, 2, 0, 3)
    w_proj_heads = w_proj_t.reshape(N_HEAD, HD, EMB)
    return w_qkv_heads, w_proj_heads


def mha_reference(x, w_qkv_t, w_proj_t, b_proj):
    """Pure-JAX reference mirroring the PyTorch forward exactly."""
    Bq, Nq, Cq = x.shape
    qkv = x @ w_qkv_t                                             # (B, N, 3C)
    qkv = qkv.reshape(Bq, Nq, 3, N_HEAD, Cq // N_HEAD)
    qkv = jnp.transpose(qkv, (2, 0, 3, 1, 4))                     # (3, B, H, N, d)
    q, k, v = qkv[0], qkv[1], qkv[2]
    w = jnp.einsum("bhnd,bhmd->bhnm", q, k) * SCALE
    w = jax.nn.softmax(w, axis=-1)
    out = jnp.einsum("bhnm,bhmd->bhnd", w, v)
    out = jnp.transpose(out, (0, 2, 1, 3)).reshape(Bq, Nq, Cq)
    return out @ w_proj_t + b_proj[0]


if __name__ == "__main__":
    key = jax.random.PRNGKey(0)
    kx, kqkv, kproj, kb = jax.random.split(key, 4)

    x = jax.random.normal(kx, (B, N, EMB), dtype=jnp.float32)

    # deterministic synthetic parameters (nn.Linear shapes, pre-transposed)
    w_qkv_t = 0.02 * jax.random.normal(kqkv, (EMB, 3 * EMB), dtype=jnp.float32)
    w_proj_t = 0.02 * jax.random.normal(kproj, (EMB, EMB), dtype=jnp.float32)
    b_proj = 0.01 * jax.random.normal(kb, (1, EMB), dtype=jnp.float32)

    # one-time parameter preparation for the kernel layout
    w_qkv_heads, w_proj_heads = prepare_params(w_qkv_t, w_proj_t)

    out = multi_head_attention(x, w_qkv_heads, w_proj_heads, b_proj)
    out = jax.block_until_ready(out)

    ref = mha_reference(x, w_qkv_t, w_proj_t, b_proj)
    assert out.shape == (B, N, EMB)
    # approx=True reciprocal in the softmax is not bit-exact with the exact
    # division in the reference; tolerance relaxed accordingly.
    assert jnp.allclose(out, ref, atol=1e-4, rtol=1e-4), "mismatch vs reference"

    print("KERNEL_OK")
</pallas_src>

<mosaic_0001>
module attributes {stable_mosaic.version = 11 : i64} {
  func.func @mha_kernel(%arg0: memref<16x32xf32, #tpu.memory_space<vmem>>, %arg1: memref<3x4x32x8xf32, #tpu.memory_space<vmem>>, %arg2: memref<4x8x32xf32, #tpu.memory_space<vmem>>, %arg3: memref<1x32xf32, #tpu.memory_space<vmem>>, %arg4: memref<16x32xf32, #tpu.memory_space<vmem>>) attributes {dimension_semantics = [], scalar_prefetch = 0 : i64, scratch_operands = 0 : i64, tpu.core_type = #tpu.core_type<tc>} {
    %c0 = arith.constant 0 : index
    %c0_0 = arith.constant 0 : index
    %0 = vector.load %arg0[%c0, %c0_0] : memref<16x32xf32, #tpu.memory_space<vmem>>, vector<16x32xf32>
    %cst = arith.constant 0.000000e+00 : f32
    %1 = vector.broadcast %cst : f32 to vector<16x32xf32>
    %c0_1 = arith.constant 0 : index
    %c0_2 = arith.constant 0 : index
    %c0_3 = arith.constant 0 : index
    %c0_4 = arith.constant 0 : index
    %2 = vector.load %arg1[%c0_1, %c0_2, %c0_3, %c0_4] : memref<3x4x32x8xf32, #tpu.memory_space<vmem>>, vector<1x1x32x8xf32>
    %3 = vector.shape_cast %2 : vector<1x1x32x8xf32> to vector<32x8xf32>
    %cst_5 = arith.constant dense<0.000000e+00> : vector<16x8xf32>
    %4 = tpu.matmul %0, %3, %cst_5 {dimension_numbers = #tpu.dot_dimension_numbers<[1], [0], [0], [1], [0, 0, 1, 1], [], []>} : vector<16x32xf32>, vector<32x8xf32>, vector<16x8xf32> -> vector<16x8xf32>
    %c1 = arith.constant 1 : index
    %c0_6 = arith.constant 0 : index
    %c0_7 = arith.constant 0 : index
    %c0_8 = arith.constant 0 : index
    %5 = vector.load %arg1[%c1, %c0_6, %c0_7, %c0_8] : memref<3x4x32x8xf32, #tpu.memory_space<vmem>>, vector<1x1x32x8xf32>
    %6 = vector.shape_cast %5 : vector<1x1x32x8xf32> to vector<32x8xf32>
    %cst_9 = arith.constant dense<0.000000e+00> : vector<16x8xf32>
    %7 = tpu.matmul %0, %6, %cst_9 {dimension_numbers = #tpu.dot_dimension_numbers<[1], [0], [0], [1], [0, 0, 1, 1], [], []>} : vector<16x32xf32>, vector<32x8xf32>, vector<16x8xf32> -> vector<16x8xf32>
    %c2 = arith.constant 2 : index
    %c0_10 = arith.constant 0 : index
    %c0_11 = arith.constant 0 : index
    %c0_12 = arith.constant 0 : index
    %8 = vector.load %arg1[%c2, %c0_10, %c0_11, %c0_12] : memref<3x4x32x8xf32, #tpu.memory_space<vmem>>, vector<1x1x32x8xf32>
    %9 = vector.shape_cast %8 : vector<1x1x32x8xf32> to vector<32x8xf32>
    %cst_13 = arith.constant dense<0.000000e+00> : vector<16x8xf32>
    %10 = tpu.matmul %0, %9, %cst_13 {dimension_numbers = #tpu.dot_dimension_numbers<[1], [0], [0], [1], [0, 0, 1, 1], [], []>} : vector<16x32xf32>, vector<32x8xf32>, vector<16x8xf32> -> vector<16x8xf32>
    %11 = vector.shape_cast %4 : vector<16x8xf32> to vector<2x8x8xf32>
    %12 = vector.shape_cast %7 : vector<16x8xf32> to vector<2x8x8xf32>
    %13 = vector.shape_cast %10 : vector<16x8xf32> to vector<2x8x8xf32>
    "tpu.trace_start"() <{level = 10 : i32, message = "bid,bjd->bij"}> : () -> ()
    %cst_14 = arith.constant dense<0.000000e+00> : vector<2x8x8xf32>
    %14 = tpu.matmul %11, %12, %cst_14 {dimension_numbers = #tpu.dot_dimension_numbers<[2], [2], [1], [1], [0, 0, 0, 1, 1, 1], [0], [0]>} : vector<2x8x8xf32>, vector<2x8x8xf32>, vector<2x8x8xf32> -> vector<2x8x8xf32>
    "tpu.trace_stop"() : () -> ()
    %cst_15 = arith.constant dense<0xFF800000> : vector<2x8xf32>
    %15 = vector.multi_reduction <maximumf>, %14, %cst_15 [2] : vector<2x8x8xf32> to vector<2x8xf32>
    %16 = vector.shape_cast %15 : vector<2x8xf32> to vector<2x8x1xf32>
    %17 = vector.broadcast %16 : vector<2x8x1xf32> to vector<2x8x8xf32>
    %18 = arith.subf %14, %17 : vector<2x8x8xf32>
    %19 = math.exp %18 : vector<2x8x8xf32>
    %cst_16 = arith.constant dense<0.000000e+00> : vector<2x8xf32>
    %20 = vector.multi_reduction <add>, %19, %cst_16 [2] : vector<2x8x8xf32> to vector<2x8xf32>
    %21 = vector.shape_cast %20 : vector<2x8xf32> to vector<2x8x1xf32>
    %22 = tpu.reciprocal %21 {approx = true} : vector<2x8x1xf32> -> vector<2x8x1xf32>
    %23 = vector.broadcast %22 : vector<2x8x1xf32> to vector<2x8x8xf32>
    %24 = arith.mulf %19, %23 : vector<2x8x8xf32>
    "tpu.trace_start"() <{level = 10 : i32, message = "bij,bjd->bid"}> : () -> ()
    %cst_17 = arith.constant dense<0.000000e+00> : vector<2x8x8xf32>
    %25 = tpu.matmul %24, %13, %cst_17 {dimension_numbers = #tpu.dot_dimension_numbers<[2], [1], [1], [2], [0, 0, 0, 1, 1, 2], [0], [0]>} : vector<2x8x8xf32>, vector<2x8x8xf32>, vector<2x8x8xf32> -> vector<2x8x8xf32>
    "tpu.trace_stop"() : () -> ()
    %26 = vector.shape_cast %25 : vector<2x8x8xf32> to vector<16x8xf32>
    %c0_18 = arith.constant 0 : index
    %c0_19 = arith.constant 0 : index
    %c0_20 = arith.constant 0 : index
    %27 = vector.load %arg2[%c0_18, %c0_19, %c0_20] : memref<4x8x32xf32, #tpu.memory_space<vmem>>, vector<1x8x32xf32>
    %28 = vector.shape_cast %27 : vector<1x8x32xf32> to vector<8x32xf32>
    %cst_21 = arith.constant dense<0.000000e+00> : vector<16x32xf32>
    %29 = tpu.matmul %26, %28, %cst_21 {dimension_numbers = #tpu.dot_dimension_numbers<[1], [0], [0], [1], [0, 0, 1, 1], [], []>} : vector<16x8xf32>, vector<8x32xf32>, vector<16x32xf32> -> vector<16x32xf32>
    %30 = arith.addf %1, %29 : vector<16x32xf32>
    %c0_22 = arith.constant 0 : index
    %c1_23 = arith.constant 1 : index
    %c0_24 = arith.constant 0 : index
    %c0_25 = arith.constant 0 : index
    %31 = vector.load %arg1[%c0_22, %c1_23, %c0_24, %c0_25] : memref<3x4x32x8xf32, #tpu.memory_space<vmem>>, vector<1x1x32x8xf32>
    %32 = vector.shape_cast %31 : vector<1x1x32x8xf32> to vector<32x8xf32>
    %cst_26 = arith.constant dense<0.000000e+00> : vector<16x8xf32>
    %33 = tpu.matmul %0, %32, %cst_26 {dimension_numbers = #tpu.dot_dimension_numbers<[1], [0], [0], [1], [0, 0, 1, 1], [], []>} : vector<16x32xf32>, vector<32x8xf32>, vector<16x8xf32> -> vector<16x8xf32>
    %c1_27 = arith.constant 1 : index
    %c1_28 = arith.constant 1 : index
    %c0_29 = arith.constant 0 : index
    %c0_30 = arith.constant 0 : index
    %34 = vector.load %arg1[%c1_27, %c1_28, %c0_29, %c0_30] : memref<3x4x32x8xf32, #tpu.memory_space<vmem>>, vector<1x1x32x8xf32>
    %35 = vector.shape_cast %34 : vector<1x1x32x8xf32> to vector<32x8xf32>
    %cst_31 = arith.constant dense<0.000000e+00> : vector<16x8xf32>
    %36 = tpu.matmul %0, %35, %cst_31 {dimension_numbers = #tpu.dot_dimension_numbers<[1], [0], [0], [1], [0, 0, 1, 1], [], []>} : vector<16x32xf32>, vector<32x8xf32>, vector<16x8xf32> -> vector<16x8xf32>
    %c2_32 = arith.constant 2 : index
    %c1_33 = arith.constant 1 : index
    %c0_34 = arith.constant 0 : index
    %c0_35 = arith.constant 0 : index
    %37 = vector.load %arg1[%c2_32, %c1_33, %c0_34, %c0_35] : memref<3x4x32x8xf32, #tpu.memory_space<vmem>>, vector<1x1x32x8xf32>
    %38 = vector.shape_cast %37 : vector<1x1x32x8xf32> to vector<32x8xf32>
    %cst_36 = arith.constant dense<0.000000e+00> : vector<16x8xf32>
    %39 = tpu.matmul %0, %38, %cst_36 {dimension_numbers = #tpu.dot_dimension_numbers<[1], [0], [0], [1], [0, 0, 1, 1], [], []>} : vector<16x32xf32>, vector<32x8xf32>, vector<16x8xf32> -> vector<16x8xf32>
    %40 = vector.shape_cast %33 : vector<16x8xf32> to vector<2x8x8xf32>
    %41 = vector.shape_cast %36 : vector<16x8xf32> to vector<2x8x8xf32>
    %42 = vector.shape_cast %39 : vector<16x8xf32> to vector<2x8x8xf32>
    "tpu.trace_start"() <{level = 10 : i32, message = "bid,bjd->bij"}> : () -> ()
    %cst_37 = arith.constant dense<0.000000e+00> : vector<2x8x8xf32>
    %43 = tpu.matmul %40, %41, %cst_37 {dimension_numbers = #tpu.dot_dimension_numbers<[2], [2], [1], [1], [0, 0, 0, 1, 1, 1], [0], [0]>} : vector<2x8x8xf32>, vector<2x8x8xf32>, vector<2x8x8xf32> -> vector<2x8x8xf32>
    "tpu.trace_stop"() : () -> ()
    %cst_38 = arith.constant dense<0xFF800000> : vector<2x8xf32>
    %44 = vector.multi_reduction <maximumf>, %43, %cst_38 [2] : vector<2x8x8xf32> to vector<2x8xf32>
    %45 = vector.shape_cast %44 : vector<2x8xf32> to vector<2x8x1xf32>
    %46 = vector.broadcast %45 : vector<2x8x1xf32> to vector<2x8x8xf32>
    %47 = arith.subf %43, %46 : vector<2x8x8xf32>
    %48 = math.exp %47 : vector<2x8x8xf32>
    %cst_39 = arith.constant dense<0.000000e+00> : vector<2x8xf32>
    %49 = vector.multi_reduction <add>, %48, %cst_39 [2] : vector<2x8x8xf32> to vector<2x8xf32>
    %50 = vector.shape_cast %49 : vector<2x8xf32> to vector<2x8x1xf32>
    %51 = tpu.reciprocal %50 {approx = true} : vector<2x8x1xf32> -> vector<2x8x1xf32>
    %52 = vector.broadcast %51 : vector<2x8x1xf32> to vector<2x8x8xf32>
    %53 = arith.mulf %48, %52 : vector<2x8x8xf32>
    "tpu.trace_start"() <{level = 10 : i32, message = "bij,bjd->bid"}> : () -> ()
    %cst_40 = arith.constant dense<0.000000e+00> : vector<2x8x8xf32>
    %54 = tpu.matmul %53, %42, %cst_40 {dimension_numbers = #tpu.dot_dimension_numbers<[2], [1], [1], [2], [0, 0, 0, 1, 1, 2], [0], [0]>} : vector<2x8x8xf32>, vector<2x8x8xf32>, vector<2x8x8xf32> -> vector<2x8x8xf32>
    "tpu.trace_stop"() : () -> ()
    %55 = vector.shape_cast %54 : vector<2x8x8xf32> to vector<16x8xf32>
    %c1_41 = arith.constant 1 : index
    %c0_42 = arith.constant 0 : index
    %c0_43 = arith.constant 0 : index
    %56 = vector.load %arg2[%c1_41, %c0_42, %c0_43] : memref<4x8x32xf32, #tpu.memory_space<vmem>>, vector<1x8x32xf32>
    %57 = vector.shape_cast %56 : vector<1x8x32xf32> to vector<8x32xf32>
    %cst_44 = arith.constant dense<0.000000e+00> : vector<16x32xf32>
    %58 = tpu.matmul %55, %57, %cst_44 {dimension_numbers = #tpu.dot_dimension_numbers<[1], [0], [0], [1], [0, 0, 1, 1], [], []>} : vector<16x8xf32>, vector<8x32xf32>, vector<16x32xf32> -> vector<16x32xf32>
    %59 = arith.addf %30, %58 : vector<16x32xf32>
    %c0_45 = arith.constant 0 : index
    %c2_46 = arith.constant 2 : index
    %c0_47 = arith.constant 0 : index
    %c0_48 = arith.constant 0 : index
    %60 = vector.load %arg1[%c0_45, %c2_46, %c0_47, %c0_48] : memref<3x4x32x8xf32, #tpu.memory_space<vmem>>, vector<1x1x32x8xf32>
    %61 = vector.shape_cast %60 : vector<1x1x32x8xf32> to vector<32x8xf32>
    %cst_49 = arith.constant dense<0.000000e+00> : vector<16x8xf32>
    %62 = tpu.matmul %0, %61, %cst_49 {dimension_numbers = #tpu.dot_dimension_numbers<[1], [0], [0], [1], [0, 0, 1, 1], [], []>} : vector<16x32xf32>, vector<32x8xf32>, vector<16x8xf32> -> vector<16x8xf32>
    %c1_50 = arith.constant 1 : index
    %c2_51 = arith.constant 2 : index
    %c0_52 = arith.constant 0 : index
    %c0_53 = arith.constant 0 : index
    %63 = vector.load %arg1[%c1_50, %c2_51, %c0_52, %c0_53] : memref<3x4x32x8xf32, #tpu.memory_space<vmem>>, vector<1x1x32x8xf32>
    %64 = vector.shape_cast %63 : vector<1x1x32x8xf32> to vector<32x8xf32>
    %cst_54 = arith.constant dense<0.000000e+00> : vector<16x8xf32>
    %65 = tpu.matmul %0, %64, %cst_54 {dimension_numbers = #tpu.dot_dimension_numbers<[1], [0], [0], [1], [0, 0, 1, 1], [], []>} : vector<16x32xf32>, vector<32x8xf32>, vector<16x8xf32> -> vector<16x8xf32>
    %c2_55 = arith.constant 2 : index
    %c2_56 = arith.constant 2 : index
    %c0_57 = arith.constant 0 : index
    %c0_58 = arith.constant 0 : index
    %66 = vector.load %arg1[%c2_55, %c2_56, %c0_57, %c0_58] : memref<3x4x32x8xf32, #tpu.memory_space<vmem>>, vector<1x1x32x8xf32>
    %67 = vector.shape_cast %66 : vector<1x1x32x8xf32> to vector<32x8xf32>
    %cst_59 = arith.constant dense<0.000000e+00> : vector<16x8xf32>
    %68 = tpu.matmul %0, %67, %cst_59 {dimension_numbers = #tpu.dot_dimension_numbers<[1], [0], [0], [1], [0, 0, 1, 1], [], []>} : vector<16x32xf32>, vector<32x8xf32>, vector<16x8xf32> -> vector<16x8xf32>
    %69 = vector.shape_cast %62 : vector<16x8xf32> to vector<2x8x8xf32>
    %70 = vector.shape_cast %65 : vector<16x8xf32> to vector<2x8x8xf32>
    %71 = vector.shape_cast %68 : vector<16x8xf32> to vector<2x8x8xf32>
    "tpu.trace_start"() <{level = 10 : i32, message = "bid,bjd->bij"}> : () -> ()
    %cst_60 = arith.constant dense<0.000000e+00> : vector<2x8x8xf32>
    %72 = tpu.matmul %69, %70, %cst_60 {dimension_numbers = #tpu.dot_dimension_numbers<[2], [2], [1], [1], [0, 0, 0, 1, 1, 1], [0], [0]>} : vector<2x8x8xf32>, vector<2x8x8xf32>, vector<2x8x8xf32> -> vector<2x8x8xf32>
    "tpu.trace_stop"() : () -> ()
    %cst_61 = arith.constant dense<0xFF800000> : vector<2x8xf32>
    %73 = vector.multi_reduction <maximumf>, %72, %cst_61 [2] : vector<2x8x8xf32> to vector<2x8xf32>
    %74 = vector.shape_cast %73 : vector<2x8xf32> to vector<2x8x1xf32>
    %75 = vector.broadcast %74 : vector<2x8x1xf32> to vector<2x8x8xf32>
    %76 = arith.subf %72, %75 : vector<2x8x8xf32>
    %77 = math.exp %76 : vector<2x8x8xf32>
    %cst_62 = arith.constant dense<0.000000e+00> : vector<2x8xf32>
    %78 = vector.multi_reduction <add>, %77, %cst_62 [2] : vector<2x8x8xf32> to vector<2x8xf32>
    %79 = vector.shape_cast %78 : vector<2x8xf32> to vector<2x8x1xf32>
    %80 = tpu.reciprocal %79 {approx = true} : vector<2x8x1xf32> -> vector<2x8x1xf32>
    %81 = vector.broadcast %80 : vector<2x8x1xf32> to vector<2x8x8xf32>
    %82 = arith.mulf %77, %81 : vector<2x8x8xf32>
    "tpu.trace_start"() <{level = 10 : i32, message = "bij,bjd->bid"}> : () -> ()
    %cst_63 = arith.constant dense<0.000000e+00> : vector<2x8x8xf32>
    %83 = tpu.matmul %82, %71, %cst_63 {dimension_numbers = #tpu.dot_dimension_numbers<[2], [1], [1], [2], [0, 0, 0, 1, 1, 2], [0], [0]>} : vector<2x8x8xf32>, vector<2x8x8xf32>, vector<2x8x8xf32> -> vector<2x8x8xf32>
    "tpu.trace_stop"() : () -> ()
    %84 = vector.shape_cast %83 : vector<2x8x8xf32> to vector<16x8xf32>
    %c2_64 = arith.constant 2 : index
    %c0_65 = arith.constant 0 : index
    %c0_66 = arith.constant 0 : index
    %85 = vector.load %arg2[%c2_64, %c0_65, %c0_66] : memref<4x8x32xf32, #tpu.memory_space<vmem>>, vector<1x8x32xf32>
    %86 = vector.shape_cast %85 : vector<1x8x32xf32> to vector<8x32xf32>
    %cst_67 = arith.constant dense<0.000000e+00> : vector<16x32xf32>
    %87 = tpu.matmul %84, %86, %cst_67 {dimension_numbers = #tpu.dot_dimension_numbers<[1], [0], [0], [1], [0, 0, 1, 1], [], []>} : vector<16x8xf32>, vector<8x32xf32>, vector<16x32xf32> -> vector<16x32xf32>
    %88 = arith.addf %59, %87 : vector<16x32xf32>
    %c0_68 = arith.constant 0 : index
    %c3 = arith.constant 3 : index
    %c0_69 = arith.constant 0 : index
    %c0_70 = arith.constant 0 : index
    %89 = vector.load %arg1[%c0_68, %c3, %c0_69, %c0_70] : memref<3x4x32x8xf32, #tpu.memory_space<vmem>>, vector<1x1x32x8xf32>
    %90 = vector.shape_cast %89 : vector<1x1x32x8xf32> to vector<32x8xf32>
    %cst_71 = arith.constant dense<0.000000e+00> : vector<16x8xf32>
    %91 = tpu.matmul %0, %90, %cst_71 {dimension_numbers = #tpu.dot_dimension_numbers<[1], [0], [0], [1], [0, 0, 1, 1], [], []>} : vector<16x32xf32>, vector<32x8xf32>, vector<16x8xf32> -> vector<16x8xf32>
    %c1_72 = arith.constant 1 : index
    %c3_73 = arith.constant 3 : index
    %c0_74 = arith.constant 0 : index
    %c0_75 = arith.constant 0 : index
    %92 = vector.load %arg1[%c1_72, %c3_73, %c0_74, %c0_75] : memref<3x4x32x8xf32, #tpu.memory_space<vmem>>, vector<1x1x32x8xf32>
    %93 = vector.shape_cast %92 : vector<1x1x32x8xf32> to vector<32x8xf32>
    %cst_76 = arith.constant dense<0.000000e+00> : vector<16x8xf32>
    %94 = tpu.matmul %0, %93, %cst_76 {dimension_numbers = #tpu.dot_dimension_numbers<[1], [0], [0], [1], [0, 0, 1, 1], [], []>} : vector<16x32xf32>, vector<32x8xf32>, vector<16x8xf32> -> vector<16x8xf32>
    %c2_77 = arith.constant 2 : index
    %c3_78 = arith.constant 3 : index
    %c0_79 = arith.constant 0 : index
    %c0_80 = arith.constant 0 : index
    %95 = vector.load %arg1[%c2_77, %c3_78, %c0_79, %c0_80] : memref<3x4x32x8xf32, #tpu.memory_space<vmem>>, vector<1x1x32x8xf32>
    %96 = vector.shape_cast %95 : vector<1x1x32x8xf32> to vector<32x8xf32>
    %cst_81 = arith.constant dense<0.000000e+00> : vector<16x8xf32>
    %97 = tpu.matmul %0, %96, %cst_81 {dimension_numbers = #tpu.dot_dimension_numbers<[1], [0], [0], [1], [0, 0, 1, 1], [], []>} : vector<16x32xf32>, vector<32x8xf32>, vector<16x8xf32> -> vector<16x8xf32>
    %98 = vector.shape_cast %91 : vector<16x8xf32> to vector<2x8x8xf32>
    %99 = vector.shape_cast %94 : vector<16x8xf32> to vector<2x8x8xf32>
    %100 = vector.shape_cast %97 : vector<16x8xf32> to vector<2x8x8xf32>
    "tpu.trace_start"() <{level = 10 : i32, message = "bid,bjd->bij"}> : () -> ()
    %cst_82 = arith.constant dense<0.000000e+00> : vector<2x8x8xf32>
    %101 = tpu.matmul %98, %99, %cst_82 {dimension_numbers = #tpu.dot_dimension_numbers<[2], [2], [1], [1], [0, 0, 0, 1, 1, 1], [0], [0]>} : vector<2x8x8xf32>, vector<2x8x8xf32>, vector<2x8x8xf32> -> vector<2x8x8xf32>
    "tpu.trace_stop"() : () -> ()
    %cst_83 = arith.constant dense<0xFF800000> : vector<2x8xf32>
    %102 = vector.multi_reduction <maximumf>, %101, %cst_83 [2] : vector<2x8x8xf32> to vector<2x8xf32>
    %103 = vector.shape_cast %102 : vector<2x8xf32> to vector<2x8x1xf32>
    %104 = vector.broadcast %103 : vector<2x8x1xf32> to vector<2x8x8xf32>
    %105 = arith.subf %101, %104 : vector<2x8x8xf32>
    %106 = math.exp %105 : vector<2x8x8xf32>
    %cst_84 = arith.constant dense<0.000000e+00> : vector<2x8xf32>
    %107 = vector.multi_reduction <add>, %106, %cst_84 [2] : vector<2x8x8xf32> to vector<2x8xf32>
    %108 = vector.shape_cast %107 : vector<2x8xf32> to vector<2x8x1xf32>
    %109 = tpu.reciprocal %108 {approx = true} : vector<2x8x1xf32> -> vector<2x8x1xf32>
    %110 = vector.broadcast %109 : vector<2x8x1xf32> to vector<2x8x8xf32>
    %111 = arith.mulf %106, %110 : vector<2x8x8xf32>
    "tpu.trace_start"() <{level = 10 : i32, message = "bij,bjd->bid"}> : () -> ()
    %cst_85 = arith.constant dense<0.000000e+00> : vector<2x8x8xf32>
    %112 = tpu.matmul %111, %100, %cst_85 {dimension_numbers = #tpu.dot_dimension_numbers<[2], [1], [1], [2], [0, 0, 0, 1, 1, 2], [0], [0]>} : vector<2x8x8xf32>, vector<2x8x8xf32>, vector<2x8x8xf32> -> vector<2x8x8xf32>
    "tpu.trace_stop"() : () -> ()
    %113 = vector.shape_cast %112 : vector<2x8x8xf32> to vector<16x8xf32>
    %c3_86 = arith.constant 3 : index
    %c0_87 = arith.constant 0 : index
    %c0_88 = arith.constant 0 : index
    %114 = vector.load %arg2[%c3_86, %c0_87, %c0_88] : memref<4x8x32xf32, #tpu.memory_space<vmem>>, vector<1x8x32xf32>
    %115 = vector.shape_cast %114 : vector<1x8x32xf32> to vector<8x32xf32>
    %cst_89 = arith.constant dense<0.000000e+00> : vector<16x32xf32>
    %116 = tpu.matmul %113, %115, %cst_89 {dimension_numbers = #tpu.dot_dimension_numbers<[1], [0], [0], [1], [0, 0, 1, 1], [], []>} : vector<16x8xf32>, vector<8x32xf32>, vector<16x32xf32> -> vector<16x32xf32>
    %117 = arith.addf %88, %116 : vector<16x32xf32>
    %c0_90 = arith.constant 0 : index
    %c0_91 = arith.constant 0 : index
    %118 = vector.load %arg3[%c0_90, %c0_91] : memref<1x32xf32, #tpu.memory_space<vmem>>, vector<1x32xf32>
    %119 = vector.broadcast %118 : vector<1x32xf32> to vector<16x32xf32>
    %120 = arith.addf %117, %119 : vector<16x32xf32>
    %c0_92 = arith.constant 0 : index
    %c0_93 = arith.constant 0 : index
    %121 = vector.load %arg4[%c0_92, %c0_93] : memref<16x32xf32, #tpu.memory_space<vmem>>, vector<16x32xf32>
    tpu.vector_store %arg4[%c0_92, %c0_93], %120 {strides = array<i32>} : memref<16x32xf32, #tpu.memory_space<vmem>>, vector<16x32xf32>,
    return
  }
}

</mosaic_0001>

<bundles_post_ra>
// kernel: multi_head_attention.1
= control target key start
LH: loop header
LB: loop body
LE: loop exit
PB: predicated region body
PF: predicated region fallthrough
CT: control target
= control target key end

     0   :  { %s1469_s0 = inlined_call_operand.vmem [shape: f32[16,32], index: 0, kind: input, shape index: {}]   ;;  %s1470_s1 = inlined_call_operand.vmem [shape: f32[3,4,32,8], index: 1, kind: input, shape index: {}]   ;;  %s1471_s2 = inlined_call_operand.vmem [shape: f32[4,8,32], index: 2, kind: input, shape index: {}]   ;;  %s1472_s3 = inlined_call_operand.vmem [shape: f32[1,32], index: 3, kind: input, shape index: {}]   ;;  %s1473_s4 = inlined_call_operand.hbm [shape: f32[16,32], index: 4, kind: output, shape index: {}]  }
   0x1   :  { %v1001_v0 = vld [vmem:[%s1470_s1 + $0x98] sm:$0xff]  ;;  %v1000_v1 = vld [vmem:[%s1470_s1 + $0x90] sm:$0xff]  ;;  %v999_v4 = vld [vmem:[%s1470_s1 + $0x88] sm:$0xff] }
   0x2   :  { %v23_v2 = vld [vmem:[%s1470_s1 + $0x18] sm:$0xff]  ;;  %71 = vmatpush.msra.mxu1 %v1001_v0  ;;  %1099 = vmatpush.msra.mxu2 %v1001_v0  ;;  %v22_v3 = vld [vmem:[%s1470_s1 + $0x10] sm:$0xff]  ;;  %v21_v5 = vld [vmem:[%s1470_s1 + $0x8] sm:$0xff] }
   0x3   :  { %43 = vmatpush.msra.mxu0 %v23_v2 }
   0x4   :  { %72 = vmatpush.msra.mxu1 %v1000_v1  ;;  %1100 = vmatpush.msra.mxu2 %v1000_v1 }
   0x5   :  { %9 = vsyncpa [#allocation3], 0  ;;  %44 = vmatpush.msra.mxu0 %v22_v3  ;;  %v998_v6 = vld [vmem:[%s1470_s1 + $0x80] sm:$0xff]  ;;  %vm24_vm0 = vcmask 261120   ;;  %v1225_v9 = vld [vmem:[%s1469_s0 + $0x8] sm:$0xff]  ;;  %vm110_vm1 = vcmask 64512  }
   0x6   :  { %73 = vmatpush.msra.mxu1 %v999_v4  ;;  %1101 = vmatpush.msra.mxu2 %v999_v4  ;;  %v1217_v7 = vld [vmem:[%s1469_s0] sm:$0xff]  ;;  %v1007_v14 = vld [vmem:[%s1470_s1 + $0x118] sm:$0xff]  ;;  %v1006_v15 = vld [vmem:[%s1470_s1 + $0x110] sm:$0xff]  ;;  %s1165_s16 = smov [#allocation2]   ;;  %s984_s19 = sshll.u32 %s1473_s4, 4  ;;  %s985_s19 = int_to_ptr.hbm [resolvable:$true] %s984_s19 }
   0x7   :  { %v20_v8 = vld [vmem:[%s1470_s1] sm:$0xff]  ;;  %45 = vmatpush.msra.mxu0 %v21_v5  ;;  %v1005_v16 = vld [vmem:[%s1470_s1 + $0x108] sm:$0xff]  ;;  %v1025_v22 = vld [vmem:[%s1470_s1 + $0xb8] sm:$0xff]  ;;  %s982_s17 = sshll.u32 %s1165_s16, 4  ;;  %s1166_s20 = smov 128   ;;  %s983_s17 = int_to_ptr.vmem [resolvable:$true] %s982_s17 }
   0x8   :  { %74 = vmatpush.msra.mxu1 %v998_v6  ;;  %1102 = vmatpush.msra.mxu2 %v998_v6  ;;  %v1004_v21 = vld [vmem:[%s1470_s1 + $0x100] sm:$0xff]  ;;  %v1024_v23 = vld [vmem:[%s1470_s1 + $0xb0] sm:$0xff]  ;;  %v1023_v24 = vld [vmem:[%s1470_s1 + $0xa8] sm:$0xff] }
   0x9   :  { %1002 = vmatmul.msk.f32.vlgmr.msra.gmra.mxu1 %vm24_vm0, %v1217_v7  ;;  %46 = vmatpush.msra.mxu0 %v20_v8  ;;  %v1019_v25 = vld [vmem:[%s1470_s1 + $0x38] sm:$0xff]  ;;  %v1022_v26 = vld [vmem:[%s1470_s1 + $0xa0] sm:$0xff]  ;;  %v1018_v27 = vld [vmem:[%s1470_s1 + $0x30] sm:$0xff] }
   0xa   :  { %1003 = vmatmul.msk.f32.vlgmr.msra.gmra.mxu2 %vm24_vm0, %v1225_v9  ;;  %996 = vmatmul.msk.f32.vlgmr.msra.gmra.mxu0 %vm24_vm0, %v1217_v7  ;;  %v1017_v28 = vld [vmem:[%s1470_s1 + $0x28] sm:$0xff]  ;;  %v1016_v29 = vld [vmem:[%s1470_s1 + $0x20] sm:$0xff]  ;;  %v1031_v53 = vld [vmem:[%s1470_s1 + $0x138] sm:$0xff] }
   0xb   :  { %99 = vmatpush.msrb.mxu2 %v1007_v14  ;;  %249 = vmatpush.msrb.mxu1 %v1019_v25  ;;  %v231_v52 = vld [vmem:[%s1471_s2] sm:$0xff]  ;;  %v1030_v54 = vld [vmem:[%s1470_s1 + $0x130] sm:$0xff]  ;;  %v1029_v61 = vld [vmem:[%s1470_s1 + $0x128] sm:$0xff] }
   0xc   :  { %v1028_v62 = vld [vmem:[%s1470_s1 + $0x120] sm:$0xff]  ;;  %v1053_v14 = vld [vmem:[%s1470_s1 + $0xd0] sm:$0xff] }
   0xd   :  { %100 = vmatpush.msrb.mxu2 %v1006_v15  ;;  %250 = vmatpush.msrb.mxu1 %v1018_v27  ;;  %v1052_v15 = vld [vmem:[%s1470_s1 + $0xc8] sm:$0xff] }
   0xe   :  { %v1040_v27 = vld [vmem:[%s1471_s2 + $0x8] sm:$0xff] }
   0xf   :  { %101 = vmatpush.msrb.mxu2 %v1005_v16  ;;  %251 = vmatpush.msrb.mxu1 %v1017_v28  ;;  %v1051_v16 = vld [vmem:[%s1470_s1 + $0xc0] sm:$0xff] }
  0x11   :  { %102 = vmatpush.msrb.mxu2 %v1004_v21  ;;  %252 = vmatpush.msrb.mxu1 %v1016_v29 }
  0x12   :  { %997 = vmatmul.msk.f32.gmra.mxu0 %vm24_vm0, %v1225_v9  ;;  %1008 = vmatmul.msk.f32.vlgmr.msrb.gmra.mxu2 %vm24_vm0, %v1217_v7 }
  0x13   :  { %277 = vmatpush.msra.mxu2 %v1025_v22  ;;  %1020 = vmatmul.msk.f32.vlgmr.msrb.gmra.mxu1 %vm24_vm0, %v1217_v7 }
  0x15   :  { %278 = vmatpush.msra.mxu2 %v1024_v23 }
  0x17   :  { %279 = vmatpush.msra.mxu2 %v1023_v24 }
  0x19   :  { %280 = vmatpush.msra.mxu2 %v1022_v26 }
  0x1a   :  { %1009 = vmatmul.msk.f32.gmra.mxu2 %vm24_vm0, %v1225_v9 }
  0x1b   :  { %1021 = vmatmul.msk.f32.gmra.mxu1 %vm24_vm0, %v1225_v9 }
  0x22   :  { %1026 = vmatmul.msk.f32.vlgmr.msra.gmra.mxu2 %vm24_vm0, %v1217_v7 }
  0x2a   :  { %1027 = vmatmul.msk.f32.gmra.mxu2 %vm24_vm0, %v1225_v9 }
  0x86   :  { %v76_v10 = vpop.f32.mrf.mxu1 }
  0x87   :  { %1010 = vmatpush.xpose.msk.msra.mxu3 %vm110_vm1, %v76_v10  ;;  %v48_v11 = vpop.f32.mrf.mxu0 }
  0x8a   :  { %1011 = vmatmul.msk.f32.vlgmr.msra.gmra.mxu3 %vm110_vm1, %v48_v11 }
  0x8d   :  { %v79_v12 = vpop.f32.mrf.mxu2 }
  0x8e   :  { %1012 = vmatpush.xpose.msk.msrb.mxu3 %vm110_vm1, %v79_v12 }
  0x8f   :  { %v51_v13 = vpop.f32.mrf.mxu0 }
  0x90   :  { %v254_v50 = vpop.f32.mrf.mxu1 }
  0x92   :  { %1013 = vmatmul.msk.f32.vlgmr.msrb.gmra.mxu3 %vm110_vm1, %v51_v13  ;;  %v1054_v13 = vld [vmem:[%s1470_s1 + $0xd8] sm:$0xff] }
  0x95   :  { %v104_v40 = vpop.f32.mrf.mxu2 }
  0x96   :  { %203 = vmatpush.msra.mxu3 %v104_v40 }
  0x98   :  { %v257_v51 = vpop.f32.mrf.mxu1  ;;  %305 = vmatpush.msrb.mxu3 %v1031_v53 }
  0x9a   :  { %306 = vmatpush.msrb.mxu3 %v1030_v54 }
  0x9c   :  { %307 = vmatpush.msrb.mxu3 %v1029_v61  ;;  %v1074_v61 = vld [vmem:[%s1470_s1 + $0x70] sm:$0xff] }
  0x9d   :  { %v107_v41 = vpop.f32.mrf.mxu2 }
  0x9e   :  { %226 = vmatpush.msrb.mxu0 %v107_v41  ;;  %308 = vmatpush.msrb.mxu3 %v1028_v62  ;;  %v1078_v62 = vld [vmem:[%s1470_s1 + $0xe0] sm:$0xff] }
  0xa5   :  { %v282_v42 = vpop.f32.mrf.mxu2 }
  0xa6   :  { %1034 = vmatpush.xpose.msk.msra.mxu0 %vm110_vm1, %v282_v42 }
  0xad   :  { %v285_v49 = vpop.f32.mrf.mxu2 }
 0x10d   :  { %v134_v17 = vpop.f32.mrf.mxu3 }
 0x10e   :  { %v163_v18 = vsel %vm110_vm1, %v134_v17, -inf }
 0x10f   :  { %164 = vmax.xlane.f32.xlu1 %v163_v18  ;;  %v1047_v18 = vld [vmem:[%s1470_s1 + $0x50] sm:$0xff] }
 0x115   :  { %v160_v19 = vpop.f32.mrf.mxu3 }
 0x116   :  { %v166_v20 = vsel %vm110_vm1, %v160_v19, -inf }
 0x117   :  { %167 = vmax.xlane.f32.xlu0 %v166_v20  ;;  %v1045_v20 = vld [vmem:[%s1470_s1 + $0x40] sm:$0xff] }
 0x182   :  { %v165_v30 = vpop.xlane.xlu1 %164 }
 0x183   :  { %v169_v31 = vsub.f32 %v134_v17, %v165_v30  ;;  %v1048_v17 = vld [vmem:[%s1470_s1 + $0x58] sm:$0xff] }
 0x185   :  { %v171_v32 = vmul.f32 1.442695, %v169_v31 }
 0x187   :  { %1107 = vpow2.f32 %v171_v32 }
 0x18a   :  { %v168_v33 = vpop.xlane.xlu0 %167 }
 0x18b   :  { %v170_v34 = vsub.f32 %v160_v19, %v168_v33  ;;  %v1046_v19 = vld [vmem:[%s1470_s1 + $0x48] sm:$0xff] }
 0x18d   :  { %v1108_v35 = vpop.eup %1107  ;;  %v173_v36 = vmul.f32 1.442695, %v170_v34  ;;  %v1060_v34 = vld [vmem:[%s1470_s1 + $0x158] sm:$0xff] }
 0x18e   :  { %v175_v37 = vsel %vm110_vm1, %v1108_v35, 0.0 }
 0x18f   :  { %1109 = vpow2.f32 %v173_v36  ;;  %176 = vadd.xlane.f32.xlu1 %v175_v37  ;;  %v1058_v36 = vld [vmem:[%s1470_s1 + $0x148] sm:$0xff] }
 0x195   :  { %v1110_v38 = vpop.eup %1109 }
 0x196   :  { %v178_v39 = vsel %vm110_vm1, %v1110_v38, 0.0 }
 0x197   :  { %179 = vadd.xlane.f32.xlu0 %v178_v39 }
 0x202   :  { %v177_v43 = vpop.xlane.xlu1 %176 }
 0x203   :  { %1111 = vrcp.f32 %v177_v43  ;;  %v1057_v43 = vld [vmem:[%s1470_s1 + $0x140] sm:$0xff] }
 0x209   :  { %v1112_v44 = vpop.eup %1111 }
 0x20a   :  { %v183_v45 = vmul.f32 %v1112_v44, %v1108_v35  ;;  %v180_v46 = vpop.xlane.xlu0 %179  ;;  %v1059_v35 = vld [vmem:[%s1470_s1 + $0x150] sm:$0xff] }
 0x20b   :  { %1113 = vrcp.f32 %v180_v46 }
 0x20c   :  { %1014 = vmatmul.msk.f32.vlgmr.msra.gmra.mxu3 %vm110_vm1, %v183_v45 }
 0x20d   :  { %459 = vmatpush.msra.mxu3 %v1040_v27  ;;  %v1087_v27 = vld [vmem:[%s1470_s1 + $0x178] sm:$0xff] }
 0x211   :  { %v1114_v47 = vpop.eup %1113 }
 0x212   :  { %v184_v48 = vmul.f32 %v1114_v47, %v1110_v38 }
 0x214   :  { %1015 = vmatmul.msk.f32.vlgmr.msrb.gmra.mxu0 %vm110_vm1, %v184_v48  ;;  %1032 = vmatmul.msk.f32.vlgmr.msrb.gmra.mxu3 %vm24_vm0, %v1217_v7 }
 0x215   :  { %1036 = vmatpush.xpose.msk.msrb.mxu0 %vm110_vm1, %v285_v49  ;;  %569 = vmatpush.msrb.mxu3 %v1060_v34 }
 0x217   :  { %570 = vmatpush.msrb.mxu3 %v1059_v35 }
 0x219   :  { %571 = vmatpush.msrb.mxu3 %v1058_v36 }
 0x21b   :  { %572 = vmatpush.msrb.mxu3 %v1057_v43 }
 0x21c   :  { %1035 = vmatmul.msk.f32.vlgmr.msra.gmra.mxu0 %vm110_vm1, %v254_v50  ;;  %1033 = vmatmul.msk.f32.gmra.mxu3 %vm24_vm0, %v1225_v9 }
 0x21d   :  { %488 = vmatpush.msra.mxu0 %v231_v52 }
 0x224   :  { %1037 = vmatmul.msk.f32.vlgmr.msrb.gmra.mxu0 %vm110_vm1, %v257_v51 }
 0x28f   :  { %v205_v55 = vpop.f32.mrf.mxu3 }
 0x290   :  { %1043 = vmatmul.msk.f32.vlgmr.msra.gmra.mxu0 %vm110_vm1, %v205_v55 }
 0x291   :  { %v228_v56 = vpop.f32.mrf.mxu0 }
 0x297   :  { %v310_v11 = vpop.f32.mrf.mxu3 }
 0x298   :  { %1044 = vmatmul.msk.f32.gmra.mxu0 %vm110_vm1, %v228_v56  ;;  %408 = vmatpush.msra.mxu1 %v310_v11  ;;  %v1081_v56 = vld [vmem:[%s1470_s1 + $0xf8] sm:$0xff] }
 0x299   :  { %v339_v57 = vpop.f32.mrf.mxu0 }
 0x29a   :  { %v368_v60 = vsel %vm110_vm1, %v339_v57, -inf  ;;  %513 = vmatpush.msrb.mxu1 %v1048_v17 }
 0x29c   :  { %514 = vmatpush.msrb.mxu1 %v1047_v18 }
 0x29e   :  { %515 = vmatpush.msrb.mxu1 %v1046_v19 }
 0x29f   :  { %v313_v12 = vpop.f32.mrf.mxu3 }
 0x2a0   :  { %431 = vmatpush.msrb.mxu2 %v313_v12  ;;  %516 = vmatpush.msrb.mxu1 %v1045_v20 }
 0x2a1   :  { %v365_v58 = vpop.f32.mrf.mxu0 }
 0x2a2   :  { %v371_v59 = vsel %vm110_vm1, %v365_v58, -inf  ;;  %541 = vmatpush.msra.mxu2 %v1054_v13 }
 0x2a3   :  { %372 = vmax.xlane.f32.xlu2 %v371_v59  ;;  %v1075_v59 = vld [vmem:[%s1470_s1 + $0x78] sm:$0xff] }
 0x2a4   :  { %542 = vmatpush.msra.mxu2 %v1053_v14 }
 0x2a6   :  { %543 = vmatpush.msra.mxu2 %v1052_v15 }
 0x2a8   :  { %544 = vmatpush.msra.mxu2 %v1051_v16 }
 0x2ab   :  { %369 = vmax.xlane.f32.xlu2 %v368_v60  ;;  %v1079_v60 = vld [vmem:[%s1470_s1 + $0xe8] sm:$0xff] }
 0x30d   :  { %v1374_v37 = vpop.f32.mrf.mxu0 }
 0x315   :  { %v1376_v38 = vpop.f32.mrf.mxu0 }
 0x316   :  { %v373_v63 = vpop.xlane.xlu2 %372 }
 0x317   :  { %v375_v0 = vsub.f32 %v365_v58, %v373_v63  ;;  %v1080_v58 = vld [vmem:[%s1470_s1 + $0xf0] sm:$0xff]  ;;  %v1073_v63 = vld [vmem:[%s1470_s1 + $0x68] sm:$0xff] }
 0x319   :  { %v378_v1 = vmul.f32 1.442695, %v375_v0 }
 0x31b   :  { %1115 = vpow2.f32 %v378_v1  ;;  %v1072_v1 = vld [vmem:[%s1470_s1 + $0x60] sm:$0xff] }
 0x31e   :  { %v370_v2 = vpop.xlane.xlu2 %369 }
 0x31f   :  { %v374_v3 = vsub.f32 %v339_v57, %v370_v2 }
 0x321   :  { %v1116_v4 = vpop.eup %1115  ;;  %v376_v5 = vmul.f32 1.442695, %v374_v3 }
 0x322   :  { %v383_v6 = vsel %vm110_vm1, %v1116_v4, 0.0 }
 0x323   :  { %1117 = vpow2.f32 %v376_v5  ;;  %384 = vadd.xlane.f32.xlu0 %v383_v6 }
 0x329   :  { %v1118_v8 = vpop.eup %1117 }
 0x32a   :  { %v380_v10 = vsel %vm110_vm1, %v1118_v8, 0.0 }
 0x32b   :  { %381 = vadd.xlane.f32.xlu1 %v380_v10  ;;  %v1069_v10 = vld [vmem:[%s1471_s2 + $0x10] sm:$0xff] }
 0x396   :  { %v385_v21 = vpop.xlane.xlu0 %384 }
 0x397   :  { %1119 = vrcp.f32 %v385_v21 }
 0x39d   :  { %v1120_v22 = vpop.eup %1119 }
 0x39e   :  { %v389_v23 = vmul.f32 %v1120_v22, %v1116_v4  ;;  %v382_v24 = vpop.xlane.xlu1 %381 }
 0x39f   :  { %1121 = vrcp.f32 %v382_v24 }
 0x3a0   :  { %1039 = vmatmul.msk.f32.vlgmr.msrb.gmra.mxu2 %vm110_vm1, %v389_v23 }
 0x3a5   :  { %v1122_v25 = vpop.eup %1121 }
 0x3a6   :  { %v388_v26 = vmul.f32 %v1122_v25, %v1118_v8 }
 0x3a8   :  { %1038 = vmatmul.msk.f32.vlgmr.msra.gmra.mxu1 %vm110_vm1, %v388_v26  ;;  %1055 = vmatmul.msk.f32.vlgmr.msra.gmra.mxu2 %vm24_vm0, %v1217_v7 }
 0x3b0   :  { %1056 = vmatmul.msk.f32.gmra.mxu2 %vm24_vm0, %v1225_v9  ;;  %1049 = vmatmul.msk.f32.vlgmr.msrb.gmra.mxu1 %vm24_vm0, %v1217_v7 }
 0x3b8   :  { %1050 = vmatmul.msk.f32.gmra.mxu1 %vm24_vm0, %v1225_v9 }
 0x423   :  { %v433_v28 = vpop.f32.mrf.mxu2 }
 0x425   :  { %v410_v29 = vpop.f32.mrf.mxu1 }
 0x426   :  { %1041 = vmatmul.msk.f32.vlgmr.msra.gmra.mxu3 %vm110_vm1, %v410_v29  ;;  %v1085_v29 = vld [vmem:[%s1470_s1 + $0x168] sm:$0xff] }
 0x427   :  { %778 = vmatpush.msra.mxu3 %v1081_v56 }
 0x429   :  { %779 = vmatpush.msra.mxu3 %v1080_v58 }
 0x42b   :  { %v546_v30 = vpop.f32.mrf.mxu2  ;;  %780 = vmatpush.msra.mxu3 %v1079_v60 }
 0x42c   :  { %1063 = vmatpush.xpose.msk.msrb.mxu0 %vm110_vm1, %v546_v30  ;;  %v1084_v30 = vld [vmem:[%s1470_s1 + $0x160] sm:$0xff] }
 0x42d   :  { %v518_v31 = vpop.f32.mrf.mxu1  ;;  %781 = vmatpush.msra.mxu3 %v1078_v62 }
 0x42e   :  { %1042 = vmatmul.msk.f32.gmra.mxu3 %vm110_vm1, %v433_v28  ;;  %v1086_v28 = vld [vmem:[%s1470_s1 + $0x170] sm:$0xff] }
 0x42f   :  { %1064 = vmatmul.msk.f32.vlgmr.msrb.gmra.mxu0 %vm110_vm1, %v518_v31 }
 0x433   :  { %v549_v32 = vpop.f32.mrf.mxu2 }
 0x434   :  { %1065 = vmatpush.xpose.msk.msra.mxu1 %vm110_vm1, %v549_v32 }
 0x435   :  { %v521_v33 = vpop.f32.mrf.mxu1 }
 0x436   :  { %1061 = vmatmul.msk.f32.vlgmr.msrb.gmra.mxu3 %vm24_vm0, %v1217_v7 }
 0x437   :  { %1066 = vmatmul.msk.f32.vlgmr.msra.gmra.mxu1 %vm110_vm1, %v521_v33 }
 0x438   :  { %723 = vmatpush.msrb.mxu1 %v1069_v10 }
 0x43e   :  { %1062 = vmatmul.msk.f32.gmra.mxu3 %vm24_vm0, %v1225_v9 }
 0x446   :  { %1082 = vmatmul.msk.f32.vlgmr.msra.gmra.mxu3 %vm24_vm0, %v1217_v7 }
 0x44e   :  { %1083 = vmatmul.msk.f32.gmra.mxu3 %vm24_vm0, %v1225_v9 }
 0x4a9   :  { %v461_v54 = vpop.f32.mrf.mxu3 }
 0x4aa   :  { %v491_v17 = vadd.f32 %v1374_v37, %v461_v54 }
 0x4ac   :  { %v603_v39 = vpop.f32.mrf.mxu0 }
 0x4ad   :  { %v632_v40 = vsel %vm110_vm1, %v603_v39, -inf }
 0x4ae   :  { %633 = vmax.xlane.f32.xlu2 %v632_v40 }
 0x4b1   :  { %v464_v55 = vpop.f32.mrf.mxu3 }
 0x4b2   :  { %v494_v20 = vadd.f32 %v1376_v38, %v464_v55 }
 0x4b4   :  { %v629_v41 = vpop.f32.mrf.mxu1 }
 0x4b5   :  { %v635_v42 = vsel %vm110_vm1, %v629_v41, -inf }
 0x4b6   :  { %636 = vmax.xlane.f32.xlu0 %v635_v42 }
 0x4b9   :  { %v574_v57 = vpop.f32.mrf.mxu3 }
 0x4ba   :  { %672 = vmatpush.msrb.mxu2 %v574_v57 }
 0x4bc   :  { %750 = vmatpush.msra.mxu2 %v1075_v59 }
 0x4be   :  { %751 = vmatpush.msra.mxu2 %v1074_v61 }
 0x4c0   :  { %752 = vmatpush.msra.mxu2 %v1073_v63 }
 0x4c1   :  { %v577_v0 = vpop.f32.mrf.mxu3 }
 0x4c2   :  { %695 = vmatpush.msra.mxu0 %v577_v0  ;;  %753 = vmatpush.msra.mxu2 %v1072_v1 }
 0x4c4   :  { %806 = vmatpush.msrb.mxu0 %v1087_v27 }
 0x4c6   :  { %807 = vmatpush.msrb.mxu0 %v1086_v28 }
 0x4c8   :  { %808 = vmatpush.msrb.mxu0 %v1085_v29 }
 0x4c9   :  { %v783_v11 = vpop.f32.mrf.mxu3 }
 0x4ca   :  { %1090 = vmatpush.xpose.msk.msra.mxu1 %vm110_vm1, %v783_v11  ;;  %809 = vmatpush.msrb.mxu0 %v1084_v30 }
 0x4d1   :  { %v786_v12 = vpop.f32.mrf.mxu3 }
 0x521   :  { %v634_v44 = vpop.xlane.xlu2 %633 }
 0x522   :  { %v638_v45 = vsub.f32 %v603_v39, %v634_v44 }
 0x524   :  { %v640_v46 = vmul.f32 1.442695, %v638_v45 }
 0x526   :  { %1123 = vpow2.f32 %v640_v46 }
 0x529   :  { %v637_v47 = vpop.xlane.xlu0 %636 }
 0x52a   :  { %v639_v48 = vsub.f32 %v629_v41, %v637_v47  ;;  %v1096_v47 = vld [vmem:[%s1471_s2 + $0x18] sm:$0xff] }
 0x52c   :  { %v1124_v49 = vpop.eup %1123  ;;  %v642_v50 = vmul.f32 1.442695, %v639_v48 }
 0x52d   :  { %v644_v51 = vsel %vm110_vm1, %v1124_v49, 0.0 }
 0x52e   :  { %1125 = vpow2.f32 %v642_v50  ;;  %645 = vadd.xlane.f32.xlu1 %v644_v51  ;;  %v1106_v50 = vld [vmem:[%s1472_s3] ss:$0 sm:$0xff]  ;;  %s1167_s3 = smov 8  }
 0x534   :  { %v1126_v52 = vpop.eup %1125 }
 0x535   :  { %v647_v53 = vsel %vm110_vm1, %v1126_v52, 0.0 }
 0x536   :  { %648 = vadd.xlane.f32.xlu2 %v647_v53 }
 0x5a1   :  { %v646_v2 = vpop.xlane.xlu1 %645 }
 0x5a2   :  { %1127 = vrcp.f32 %v646_v2 }
 0x5a8   :  { %v1128_v3 = vpop.eup %1127 }
 0x5a9   :  { %v652_v4 = vmul.f32 %v1128_v3, %v1124_v49  ;;  %v649_v5 = vpop.xlane.xlu2 %648 }
 0x5aa   :  { %1129 = vrcp.f32 %v649_v5 }
 0x5ab   :  { %1067 = vmatmul.msk.f32.vlgmr.msrb.gmra.mxu2 %vm110_vm1, %v652_v4 }
 0x5ac   :  { %1092 = vmatpush.xpose.msk.msrb.mxu2 %vm110_vm1, %v786_v12 }
 0x5b0   :  { %v1130_v6 = vpop.eup %1129 }
 0x5b1   :  { %v653_v8 = vmul.f32 %v1130_v6, %v1126_v52 }
 0x5b3   :  { %1068 = vmatmul.msk.f32.vlgmr.msra.gmra.mxu0 %vm110_vm1, %v653_v8  ;;  %1076 = vmatmul.msk.f32.vlgmr.msra.gmra.mxu2 %vm24_vm0, %v1217_v7 }
 0x5bb   :  { %1077 = vmatmul.msk.f32.gmra.mxu2 %vm24_vm0, %v1225_v9  ;;  %1088 = vmatmul.msk.f32.vlgmr.msrb.gmra.mxu0 %vm24_vm0, %v1217_v7 }
 0x5c3   :  { %1089 = vmatmul.msk.f32.gmra.mxu0 %vm24_vm0, %v1225_v9 }
 0x62e   :  { %v674_v13 = vpop.f32.mrf.mxu2 }
 0x62f   :  { %1070 = vmatmul.msk.f32.vlgmr.msrb.gmra.mxu1 %vm110_vm1, %v674_v13 }
 0x630   :  { %v697_v14 = vpop.f32.mrf.mxu0  ;;  %960 = vmatpush.msrb.mxu1 %v1096_v47 }
 0x636   :  { %v755_v15 = vpop.f32.mrf.mxu2 }
 0x637   :  { %1071 = vmatmul.msk.f32.gmra.mxu1 %vm110_vm1, %v697_v14 }
 0x638   :  { %v811_v7 = vpop.f32.mrf.mxu0 }
 0x639   :  { %909 = vmatpush.msrb.mxu3 %v811_v7 }
 0x63e   :  { %v758_v16 = vpop.f32.mrf.mxu2 }
 0x63f   :  { %1091 = vmatmul.msk.f32.vlgmr.msra.gmra.mxu1 %vm110_vm1, %v755_v15  ;;  %1093 = vmatmul.msk.f32.vlgmr.msrb.gmra.mxu2 %vm110_vm1, %v758_v16 }
 0x640   :  { %v814_v41 = vpop.f32.mrf.mxu0 }
 0x641   :  { %932 = vmatpush.msra.mxu0 %v814_v41 }
 0x6ac   :  { %v725_v18 = vpop.f32.mrf.mxu1 }
 0x6ad   :  { %v731_v19 = vadd.f32 %v725_v18, %v491_v17 }
 0x6b4   :  { %v728_v21 = vpop.f32.mrf.mxu1 }
 0x6b5   :  { %v732_v22 = vadd.f32 %v728_v21, %v494_v20 }
 0x6bc   :  { %v840_v23 = vpop.f32.mrf.mxu1 }
 0x6bd   :  { %v869_v24 = vsel %vm110_vm1, %v840_v23, -inf }
 0x6be   :  { %870 = vmax.xlane.f32.xlu0 %v869_v24 }
 0x6c2   :  { %v866_v25 = vpop.f32.mrf.mxu2 }
 0x6c3   :  { %v872_v26 = vsel %vm110_vm1, %v866_v25, -inf }
 0x6c4   :  { %873 = vmax.xlane.f32.xlu1 %v872_v26 }
 0x731   :  { %v871_v31 = vpop.xlane.xlu0 %870 }
 0x732   :  { %v875_v32 = vsub.f32 %v840_v23, %v871_v31 }
 0x734   :  { %v877_v33 = vmul.f32 1.442695, %v875_v32 }
 0x736   :  { %1131 = vpow2.f32 %v877_v33 }
 0x737   :  { %v874_v34 = vpop.xlane.xlu1 %873 }
 0x738   :  { %v876_v35 = vsub.f32 %v866_v25, %v874_v34 }
 0x73a   :  { %v879_v36 = vmul.f32 1.442695, %v876_v35 }
 0x73c   :  { %v1132_v37 = vpop.eup %1131  ;;  %1133 = vpow2.f32 %v879_v36 }
 0x73d   :  { %v881_v38 = vsel %vm110_vm1, %v1132_v37, 0.0 }
 0x73e   :  { %882 = vadd.xlane.f32.xlu2 %v881_v38 }
 0x742   :  { %v1134_v39 = vpop.eup %1133 }
 0x743   :  { %v884_v40 = vsel %vm110_vm1, %v1134_v39, 0.0 }
 0x744   :  { %885 = vadd.xlane.f32.xlu0 %v884_v40 }
 0x7b1   :  { %v883_v9 = vpop.xlane.xlu2 %882 }
 0x7b2   :  { %1135 = vrcp.f32 %v883_v9 }
 0x7b7   :  { %v886_v42 = vpop.xlane.xlu0 %885 }
 0x7b8   :  { %v1136_v43 = vpop.eup %1135  ;;  %1137 = vrcp.f32 %v886_v42 }
 0x7b9   :  { %v889_v44 = vmul.f32 %v1136_v43, %v1132_v37 }
 0x7bb   :  { %1094 = vmatmul.msk.f32.vlgmr.msrb.gmra.mxu3 %vm110_vm1, %v889_v44 }
 0x7be   :  { %v1138_v45 = vpop.eup %1137 }
 0x7bf   :  { %v890_v46 = vmul.f32 %v1138_v45, %v1134_v39 }
 0x7c1   :  { %1095 = vmatmul.msk.f32.vlgmr.msra.gmra.mxu0 %vm110_vm1, %v890_v46 }
 0x83e   :  { %v911_v48 = vpop.f32.mrf.mxu3  ;;  %v934_v49 = vpop.f32.mrf.mxu0 }
 0x83f   :  { %1097 = vmatmul.msk.f32.vlgmr.msrb.gmra.mxu1 %vm110_vm1, %v911_v48 }
 0x847   :  { %1098 = vmatmul.msk.f32.gmra.mxu1 %vm110_vm1, %v934_v49 }
 0x8bc   :  { %v962_v51 = vpop.f32.mrf.mxu1 }
 0x8bd   :  { %v968_v52 = vadd.f32 %v962_v51, %v731_v19 }
 0x8bf   :  { %v974_v53 = vadd.f32 %v1106_v50, %v968_v52 }
 0x8c1   :  { %976 = vst.msk [vmem:[#allocation2] sm:$0xff] %vm24_vm0, %v974_v53 }
 0x8c4   :  { %v965_v54 = vpop.f32.mrf.mxu1 }
 0x8c5   :  { %v969_v55 = vadd.f32 %v965_v54, %v732_v22 }
 0x8c7   :  { %v975_v56 = vadd.f32 %v1106_v50, %v969_v55 }
 0x8c9   :  { %977 = vst.msk [vmem:[#allocation2 + $0x8] sm:$0xff] %vm24_vm0, %v975_v56 }
 0x8ca   :  { %990 = dma.vmem_to_hbm [thread:$0]  %s983_s17, 256, %s985_s19, [#allocation3], %s1166_s20, %s1166_s20, %s1167_s3  }
 0x8cb   :  { %1163 = dma.done.wait [#allocation3], 256  }
 0x8cc   :  { %1164 = vsyncadd [#allocation3], 4294967040 }
 0x8cd   :  { %995 = vsyncpa [#allocation3], 1 }

</bundles_post_ra>
